<compile_context>
chip_gen: v6e
topology: v6e:2x2x1
jax: 0.10.0
libtpu: 0.0.40
codegen_flags: <defaults>
</compile_context>

<pallas_src>
import functools

import jax
import jax.numpy as jnp
from jax.experimental import pallas as pl
from jax.experimental.pallas import tpu as pltpu


def _round_up(a, b):
    return ((a + b - 1) // b) * b


def _vae_kernel(x_ref, w_enc_ref, b_enc_ref, w_head_ref, b_head_ref,
                gamma_ref, beta_ref, out_ref, *, hidden_size):
    """One row-tile of the fused VAE forward.

    x_ref:      [T, Din]   bf16
    w_enc_ref:  [Din, Ep]  bf16   (encoder Linear, zero-padded to Ep lanes)
    b_enc_ref:  [1, Ep]    f32
    w_head_ref: [Ep, Wout] bf16   (cols 0:H = W_mu, H:2H = W_lv, rest zero)
    b_head_ref: [1, Wout]  f32
    gamma_ref:  [1, Wout]  f32    (cols 0:H = LayerNorm weight)
    beta_ref:   [1, Wout]  f32    (cols 0:H = LayerNorm bias)
    out_ref:    [T, Wout]  f32    (cols 0:H = z_exp, H:2H = z_log_var)
    """
    H = hidden_size

    # --- encoder: Linear + tanh (bf16 MXU matmul, f32 accumulate) ---
    h = jnp.dot(x_ref[...], w_enc_ref[...], preferred_element_type=jnp.float32)
    h = jnp.tanh(h + b_enc_ref[...])                         # [T, Ep] f32

    # --- fused mean/var heads: one lane-dense matmul ---
    head = jnp.dot(h.astype(w_head_ref.dtype), w_head_ref[...],
                   preferred_element_type=jnp.float32)
    head = head + b_head_ref[...]                            # [T, Wout] f32

    # --- LayerNorm over the first H lanes only (biased variance, eps=1e-5) ---
    lane = jax.lax.broadcasted_iota(jnp.int32, head.shape, 1)
    mu_mask = lane < H                                       # cols 0:H -> mu head
    mu = jnp.where(mu_mask, head, 0.0)
    mean = jnp.sum(mu, axis=-1, keepdims=True) * (1.0 / H)
    cent = jnp.where(mu_mask, head - mean, 0.0)
    var = jnp.sum(cent * cent, axis=-1, keepdims=True) * (1.0 / H)
    normed = cent * jax.lax.rsqrt(var + 1e-5)
    z = normed * gamma_ref[...] + beta_ref[...]

    # cols 0:H -> LayerNorm(mu), cols H:2H -> log-var head (unchanged), rest -> padding
    out_ref[...] = jnp.where(mu_mask, z, head)


def init_params(key, d_in, enc_out, hidden_size):
    """PyTorch-style uniform(-1/sqrt(fan_in), 1/sqrt(fan_in)) init (natural layout)."""
    ks = jax.random.split(key, 6)

    def lin(kw, kb, fan_in, fan_out):
        bound = 1.0 / jnp.sqrt(fan_in)
        w = jax.random.uniform(kw, (fan_in, fan_out), jnp.float32, -bound, bound)
        b = jax.random.uniform(kb, (1, fan_out), jnp.float32, -bound, bound)
        return w, b

    w_enc, b_enc = lin(ks[0], ks[1], d_in, enc_out)
    w_mu, b_mu = lin(ks[2], ks[3], enc_out, hidden_size)
    w_lv, b_lv = lin(ks[4], ks[5], enc_out, hidden_size)
    gamma = jnp.ones((1, hidden_size), jnp.float32)
    beta = jnp.zeros((1, hidden_size), jnp.float32)
    return (w_enc, b_enc, w_mu, b_mu, w_lv, b_lv, gamma, beta)


def pack_params(params, *, lane=128, matmul_dtype=jnp.bfloat16):
    """Pack/pad params into the kernel layout (done once, outside the hot path)."""
    w_enc, b_enc, w_mu, b_mu, w_lv, b_lv, gamma, beta = params
    d_in, E = w_enc.shape
    H = w_mu.shape[1]
    E_pad = _round_up(E, lane)
    Wout = _round_up(max(2 * H, lane), lane)

    w_enc_p = jnp.zeros((d_in, E_pad), jnp.float32).at[:, :E].set(w_enc).astype(matmul_dtype)
    b_enc_p = jnp.zeros((1, E_pad), jnp.float32).at[:, :E].set(b_enc)

    w_head = jnp.zeros((E_pad, Wout), jnp.float32)
    w_head = w_head.at[:E, :H].set(w_mu).at[:E, H:2 * H].set(w_lv).astype(matmul_dtype)
    b_head = jnp.zeros((1, Wout), jnp.float32).at[:, :H].set(b_mu).at[:, H:2 * H].set(b_lv)

    gamma_p = jnp.zeros((1, Wout), jnp.float32).at[:, :H].set(gamma)
    beta_p = jnp.zeros((1, Wout), jnp.float32).at[:, :H].set(beta)
    return (w_enc_p, b_enc_p, w_head, b_head, gamma_p, beta_p)


def vae_forward(inputs, packed_params, hidden_size, *, row_tile=256):
    """inputs: [nB, nT, nC, nW, nH] float32. Returns (z_exp, z_log_var), [nB, nT, H] each."""
    nB, nT, nC, nW, nH = inputs.shape
    N = nB * nT
    Din = nC * nW * nH
    H = hidden_size

    w_enc_p, b_enc_p, w_head, b_head, gamma_p, beta_p = packed_params
    E_pad = w_enc_p.shape[1]
    Wout = w_head.shape[1]

    # bf16 activations halve HBM traffic; matmuls still accumulate in f32.
    x = inputs.reshape(N, Din).astype(jnp.bfloat16)

    # Row tiling: keep tiles a multiple of 16 (bf16 sublane packing); pad N if needed.
    row_tile = max(16, _round_up(row_tile, 16))
    if N < row_tile:
        row_tile = _round_up(N, 16)
    N_pad = _round_up(N, row_tile)
    if N_pad != N:
        x = jnp.pad(x, ((0, N_pad - N), (0, 0)))
    grid = (N_pad // row_tile,)

    full = lambda i: (0, 0)  # whole-array (un-tiled) blocks for weights/biases
    # NOTE: at these sizes the resident (double-buffered) weights are <0.5 MiB; for huge
    # conv-flattened Din on v7x, add a K grid axis over W_enc (f32 accumulator + pl.when
    # init/finalize) and/or pipeline_mode=pl.Buffered(1) on the constant weight specs.

    # VMEM budget: double-buffered x tile + output tile + resident weights, 2x headroom,
    # clamped to 48 MiB so it stays safe on v7x (64 MiB physical VMEM).
    vmem_est = (
        2 * row_tile * Din * x.dtype.itemsize
        + 2 * row_tile * Wout * 4
        + 2 * (w_enc_p.size * w_enc_p.dtype.itemsize
               + w_head.size * w_head.dtype.itemsize)
        + 2 * 4 * (E_pad + 3 * Wout)
    )
    vmem_limit = int(min(max(2 * vmem_est, 32 * 1024 * 1024), 48 * 1024 * 1024))

    cost = pl.CostEstimate(
        flops=int(2 * N_pad * Din * E_pad + 2 * N_pad * E_pad * Wout + 12 * N_pad * Wout),
        transcendentals=int(N_pad * E_pad + N_pad),
        bytes_accessed=int(
            N_pad * Din * x.dtype.itemsize
            + w_enc_p.size * w_enc_p.dtype.itemsize
            + w_head.size * w_head.dtype.itemsize
            + 4 * (E_pad + 3 * Wout)
            + N_pad * Wout * 4
        ),
    )

    out = pl.pallas_call(
        functools.partial(_vae_kernel, hidden_size=H),
        out_shape=jax.ShapeDtypeStruct((N_pad, Wout), jnp.float32),
        grid_spec=pltpu.PrefetchScalarGridSpec(
            num_scalar_prefetch=0,
            grid=grid,
            in_specs=[
                pl.BlockSpec((row_tile, Din), lambda i: (i, 0)),   # x rows
                pl.BlockSpec((Din, E_pad), full),                  # W_enc (bf16)
                pl.BlockSpec((1, E_pad), full),                    # b_enc
                pl.BlockSpec((E_pad, Wout), full),                 # fused W_mu|W_lv (bf16)
                pl.BlockSpec((1, Wout), full),                     # fused b_mu|b_lv
                pl.BlockSpec((1, Wout), full),                     # gamma (padded)
                pl.BlockSpec((1, Wout), full),                     # beta  (padded)
            ],
            out_specs=pl.BlockSpec((row_tile, Wout), lambda i: (i, 0)),
        ),
        compiler_params=pltpu.CompilerParams(
            dimension_semantics=("parallel",),
            vmem_limit_bytes=vmem_limit,
        ),
        cost_estimate=cost,
    )(x, w_enc_p, b_enc_p, w_head, b_head, gamma_p, beta_p)

    z_exp = out[:N, :H].reshape(nB, nT, H)
    z_log_var = out[:N, H:2 * H].reshape(nB, nT, H)
    return z_exp, z_log_var


def vae_forward_ref(inputs, params, hidden_size):
    """Plain-JAX f32 reference matching the PyTorch module semantics."""
    nB, nT, nC, nW, nH = inputs.shape
    x = inputs.reshape(nB * nT, nC * nW * nH)
    w_enc, b_enc, w_mu, b_mu, w_lv, b_lv, gamma, beta = params
    h = jnp.tanh(x @ w_enc + b_enc)
    mu = h @ w_mu + b_mu
    lv = h @ w_lv + b_lv
    mean = jnp.mean(mu, axis=-1, keepdims=True)
    var = jnp.mean((mu - mean) ** 2, axis=-1, keepdims=True)
    z = (mu - mean) / jnp.sqrt(var + 1e-5) * gamma + beta
    return (z.reshape(nB, nT, hidden_size), lv.reshape(nB, nT, hidden_size))


if __name__ == "__main__":
    # Small shapes consistent with forward(): [nB, nT, nC, nW, nH]
    nB, nT, nC, nW, nH = 2, 8, 4, 16, 16
    hidden_size = 32
    encoder_output_size = 64

    key = jax.random.PRNGKey(0)
    k_x, k_p = jax.random.split(key)
    inputs = jax.random.normal(k_x, (nB, nT, nC, nW, nH), jnp.float32)
    params = init_params(k_p, nC * nW * nH, encoder_output_size, hidden_size)
    packed = pack_params(params)

    z_exp, z_log_var = vae_forward(inputs, packed, hidden_size)
    jax.block_until_ready((z_exp, z_log_var))

    z_exp_ref, z_lv_ref = vae_forward_ref(inputs, params, hidden_size)
    assert z_exp.shape == (nB, nT, hidden_size)
    assert z_log_var.shape == (nB, nT, hidden_size)
    # bf16 matmul operands (f32 accumulate) -> loosened tolerance vs the f32 reference.
    assert jnp.allclose(z_exp, z_exp_ref, atol=5e-2, rtol=5e-2)
    assert jnp.allclose(z_log_var, z_lv_ref, atol=5e-2, rtol=5e-2)

    # TODO(synk): reconstruct()/loss() need the (abstract) decoder + torch.randn_like
    # sampling; only the forward() path (encoder -> fused mean/var heads -> layernorm)
    # is kernelized here.
    print("KERNEL_OK")
</pallas_src>

<mosaic_0001>
module attributes {stable_mosaic.version = 11 : i64} {
  func.func @_vae_kernel(%arg0: i32, %arg1: memref<16x1024xbf16, #tpu.memory_space<vmem>>, %arg2: memref<1024x128xbf16, #tpu.memory_space<vmem>>, %arg3: memref<1x128xf32, #tpu.memory_space<vmem>>, %arg4: memref<128x128xbf16, #tpu.memory_space<vmem>>, %arg5: memref<1x128xf32, #tpu.memory_space<vmem>>, %arg6: memref<1x128xf32, #tpu.memory_space<vmem>>, %arg7: memref<1x128xf32, #tpu.memory_space<vmem>>, %arg8: memref<16x128xf32, #tpu.memory_space<vmem>>) attributes {dimension_semantics = [#tpu.dimension_semantics<parallel>], iteration_bounds = array<i64: 1>, scalar_prefetch = 0 : i64, scratch_operands = 0 : i64, tpu.core_type = #tpu.core_type<tc>, window_params = [{transform_indices = @transform_0, window_bounds = array<i64: 16, 1024>}, {pipeline_mode = #tpu.pipeline_mode<synchronous>, transform_indices = @transform_1, window_bounds = array<i64: 1024, 128>}, {pipeline_mode = #tpu.pipeline_mode<synchronous>, transform_indices = @transform_2, window_bounds = array<i64: 1, 128>}, {pipeline_mode = #tpu.pipeline_mode<synchronous>, transform_indices = @transform_3, window_bounds = array<i64: 128, 128>}, {pipeline_mode = #tpu.pipeline_mode<synchronous>, transform_indices = @transform_4, window_bounds = array<i64: 1, 128>}, {pipeline_mode = #tpu.pipeline_mode<synchronous>, transform_indices = @transform_5, window_bounds = array<i64: 1, 128>}, {pipeline_mode = #tpu.pipeline_mode<synchronous>, transform_indices = @transform_6, window_bounds = array<i64: 1, 128>}, {transform_indices = @transform_7, window_bounds = array<i64: 16, 128>}]} {
    %c0 = arith.constant 0 : index
    %c0_0 = arith.constant 0 : index
    %0 = vector.load %arg1[%c0, %c0_0] : memref<16x1024xbf16, #tpu.memory_space<vmem>>, vector<16x1024xbf16>
    %c0_1 = arith.constant 0 : index
    %c0_2 = arith.constant 0 : index
    %1 = vector.load %arg2[%c0_1, %c0_2] : memref<1024x128xbf16, #tpu.memory_space<vmem>>, vector<1024x128xbf16>
    %cst = arith.constant dense<0.000000e+00> : vector<16x128xf32>
    %2 = tpu.matmul %0, %1, %cst {dimension_numbers = #tpu.dot_dimension_numbers<[1], [0], [0], [1], [0, 0, 1, 1], [], []>} : vector<16x1024xbf16>, vector<1024x128xbf16>, vector<16x128xf32> -> vector<16x128xf32>
    %c0_3 = arith.constant 0 : index
    %c0_4 = arith.constant 0 : index
    %3 = vector.load %arg3[%c0_3, %c0_4] : memref<1x128xf32, #tpu.memory_space<vmem>>, vector<1x128xf32>
    %4 = vector.broadcast %3 : vector<1x128xf32> to vector<16x128xf32>
    %5 = arith.addf %2, %4 : vector<16x128xf32>
    %6 = math.tanh %5 : vector<16x128xf32>
    %7 = arith.truncf %6 : vector<16x128xf32> to vector<16x128xbf16>
    %c0_5 = arith.constant 0 : index
    %c0_6 = arith.constant 0 : index
    %8 = vector.load %arg4[%c0_5, %c0_6] : memref<128x128xbf16, #tpu.memory_space<vmem>>, vector<128x128xbf16>
    %cst_7 = arith.constant dense<0.000000e+00> : vector<16x128xf32>
    %9 = tpu.matmul %7, %8, %cst_7 {dimension_numbers = #tpu.dot_dimension_numbers<[1], [0], [0], [1], [0, 0, 1, 1], [], []>} : vector<16x128xbf16>, vector<128x128xbf16>, vector<16x128xf32> -> vector<16x128xf32>
    %c0_8 = arith.constant 0 : index
    %c0_9 = arith.constant 0 : index
    %10 = vector.load %arg5[%c0_8, %c0_9] : memref<1x128xf32, #tpu.memory_space<vmem>>, vector<1x128xf32>
    %11 = vector.broadcast %10 : vector<1x128xf32> to vector<16x128xf32>
    %12 = arith.addf %9, %11 : vector<16x128xf32>
    %13 = tpu.iota {dimensions = array<i32: 1>} : vector<16x128xi32>
    %c32_i32 = arith.constant 32 : i32
    %14 = vector.broadcast %c32_i32 : i32 to vector<16x128xi32>
    %15 = arith.cmpi slt, %13, %14 : vector<16x128xi32>
    %cst_10 = arith.constant 0.000000e+00 : f32
    %16 = vector.broadcast %cst_10 : f32 to vector<16x128xf32>
    %17 = arith.select %15, %12, %16 : vector<16x128xi1>, vector<16x128xf32>
    %cst_11 = arith.constant dense<0.000000e+00> : vector<16xf32>
    %18 = vector.multi_reduction <add>, %17, %cst_11 [1] : vector<16x128xf32> to vector<16xf32>
    %19 = vector.shape_cast %18 : vector<16xf32> to vector<16x1xf32>
    %cst_12 = arith.constant 3.125000e-02 : f32
    %20 = vector.broadcast %cst_12 : f32 to vector<16x1xf32>
    %21 = arith.mulf %19, %20 : vector<16x1xf32>
    %22 = vector.broadcast %21 : vector<16x1xf32> to vector<16x128xf32>
    %23 = arith.subf %12, %22 : vector<16x128xf32>
    %cst_13 = arith.constant 0.000000e+00 : f32
    %24 = vector.broadcast %cst_13 : f32 to vector<16x128xf32>
    %25 = arith.select %15, %23, %24 : vector<16x128xi1>, vector<16x128xf32>
    %26 = arith.mulf %25, %25 : vector<16x128xf32>
    %cst_14 = arith.constant dense<0.000000e+00> : vector<16xf32>
    %27 = vector.multi_reduction <add>, %26, %cst_14 [1] : vector<16x128xf32> to vector<16xf32>
    %28 = vector.shape_cast %27 : vector<16xf32> to vector<16x1xf32>
    %cst_15 = arith.constant 3.125000e-02 : f32
    %29 = vector.broadcast %cst_15 : f32 to vector<16x1xf32>
    %30 = arith.mulf %28, %29 : vector<16x1xf32>
    %cst_16 = arith.constant 9.99999974E-6 : f32
    %31 = vector.broadcast %cst_16 : f32 to vector<16x1xf32>
    %32 = arith.addf %30, %31 : vector<16x1xf32>
    %33 = math.rsqrt %32 : vector<16x1xf32>
    %34 = vector.broadcast %33 : vector<16x1xf32> to vector<16x128xf32>
    %35 = arith.mulf %25, %34 : vector<16x128xf32>
    %c0_17 = arith.constant 0 : index
    %c0_18 = arith.constant 0 : index
    %36 = vector.load %arg6[%c0_17, %c0_18] : memref<1x128xf32, #tpu.memory_space<vmem>>, vector<1x128xf32>
    %37 = vector.broadcast %36 : vector<1x128xf32> to vector<16x128xf32>
    %38 = arith.mulf %35, %37 : vector<16x128xf32>
    %c0_19 = arith.constant 0 : index
    %c0_20 = arith.constant 0 : index
    %39 = vector.load %arg7[%c0_19, %c0_20] : memref<1x128xf32, #tpu.memory_space<vmem>>, vector<1x128xf32>
    %40 = vector.broadcast %39 : vector<1x128xf32> to vector<16x128xf32>
    %41 = arith.addf %38, %40 : vector<16x128xf32>
    %42 = arith.select %15, %41, %12 : vector<16x128xi1>, vector<16x128xf32>
    %c0_21 = arith.constant 0 : index
    %c0_22 = arith.constant 0 : index
    %43 = vector.load %arg8[%c0_21, %c0_22] : memref<16x128xf32, #tpu.memory_space<vmem>>, vector<16x128xf32>
    tpu.vector_store %arg8[%c0_21, %c0_22], %42 {strides = array<i32>} : memref<16x128xf32, #tpu.memory_space<vmem>>, vector<16x128xf32>,
    return
  }
  func.func @transform_0(%arg0: i32) -> (i32, i32) {
    %c0_i32 = arith.constant 0 : i32
    %c0_i32_0 = arith.constant 0 : i32
    return %arg0, %c0_i32 : i32, i32
  }
  func.func @transform_1(%arg0: i32) -> (i32, i32) {
    %c0_i32 = arith.constant 0 : i32
    %c0_i32_0 = arith.constant 0 : i32
    %c0_i32_1 = arith.constant 0 : i32
    return %c0_i32, %c0_i32_0 : i32, i32
  }
  func.func @transform_2(%arg0: i32) -> (i32, i32) {
    %c0_i32 = arith.constant 0 : i32
    %c0_i32_0 = arith.constant 0 : i32
    %c0_i32_1 = arith.constant 0 : i32
    return %c0_i32, %c0_i32_0 : i32, i32
  }
  func.func @transform_3(%arg0: i32) -> (i32, i32) {
    %c0_i32 = arith.constant 0 : i32
    %c0_i32_0 = arith.constant 0 : i32
    %c0_i32_1 = arith.constant 0 : i32
    return %c0_i32, %c0_i32_0 : i32, i32
  }
  func.func @transform_4(%arg0: i32) -> (i32, i32) {
    %c0_i32 = arith.constant 0 : i32
    %c0_i32_0 = arith.constant 0 : i32
    %c0_i32_1 = arith.constant 0 : i32
    return %c0_i32, %c0_i32_0 : i32, i32
  }
  func.func @transform_5(%arg0: i32) -> (i32, i32) {
    %c0_i32 = arith.constant 0 : i32
    %c0_i32_0 = arith.constant 0 : i32
    %c0_i32_1 = arith.constant 0 : i32
    return %c0_i32, %c0_i32_0 : i32, i32
  }
  func.func @transform_6(%arg0: i32) -> (i32, i32) {
    %c0_i32 = arith.constant 0 : i32
    %c0_i32_0 = arith.constant 0 : i32
    %c0_i32_1 = arith.constant 0 : i32
    return %c0_i32, %c0_i32_0 : i32, i32
  }
  func.func @transform_7(%arg0: i32) -> (i32, i32) {
    %c0_i32 = arith.constant 0 : i32
    %c0_i32_0 = arith.constant 0 : i32
    return %arg0, %c0_i32 : i32, i32
  }
}

</mosaic_0001>

<bundles_post_ra>
// kernel: tpu_custom_call.1
= control target key start
LH: loop header
LB: loop body
LE: loop exit
PB: predicated region body
PF: predicated region fallthrough
CT: control target
= control target key end

     0   :  { %12 = vsyncpa [#allocation3], 0  ;;  %s1445_s0 = inlined_call_operand.hbm [shape: bf16[16,1024], index: 0, kind: input, shape index: {}]   ;;  %s1446_s1 = inlined_call_operand.hbm [shape: bf16[1024,128], index: 1, kind: input, shape index: {}]   ;;  %s1447_s2 = inlined_call_operand.vmem [shape: f32[1,128], index: 2, kind: input, shape index: {}]   ;;  %s1448_s3 = inlined_call_operand.hbm [shape: bf16[128,128], index: 3, kind: input, shape index: {}]   ;;  %s1449_s4 = inlined_call_operand.vmem [shape: f32[1,128], index: 4, kind: input, shape index: {}]   ;;  %s1450_s5 = inlined_call_operand.vmem [shape: f32[1,128], index: 5, kind: input, shape index: {}]   ;;  %s1451_s6 = inlined_call_operand.vmem [shape: f32[1,128], index: 6, kind: input, shape index: {}]   ;;  %s1452_s7 = inlined_call_operand.hbm [shape: f32[16,128], index: 7, kind: output, shape index: {}]  }
   0x1   :  { %13 = vsyncpa [#allocation6], 0 }
   0x2   :  { %14 = vsyncpa [#allocation4], 0  ;;  %s1363_s24 = smov [#allocation5]  }
   0x3   :  { %s32_s25 = sshll.u32 %s1363_s24, 4  ;;  %s33_s25 = int_to_ptr.vmem [resolvable:$true] %s32_s25 }
   0x4   :  { %s1285_s26 = scalar_lea.vmem %s33_s25, 8192  ;;  %p1290_p1 = scmp.lt.s32.totalorder %s33_s25, %s33_s25 }
   0x5   :  { %p1286_p0 = scmp.ne.s32.totalorder %s33_s25, %s1285_s26  ;;  %p1291_p2 = scmp.lt.s32.totalorder %s1285_s26, %s1285_s26 }
   0x7   :  { %p1292_p3 = por %p1291_p2, %p1290_p1 }
   0x9   :  { %p1293_p4 = pnand %p1292_p3, %p1286_p0 }
   0xb   :  { %1296 = shalt.err (!%p1293_p4)
}
   0xc   :  { %s1364_s27 = smov 64   ;;  %s1365_s28 = smov 4  }
   0xd   :  { %38 = dma.hbm_to_vmem [thread:$0]  %s1446_s1, 8192, %s33_s25, [#allocation6], %s1364_s27, %s1364_s27, %s1365_s28  }
   0xe   :  { %s1366_s8 = smov [#allocation2]  }
   0xf   :  { %s20_s9 = sshll.u32 %s1366_s8, 4  ;;  %s21_s9 = int_to_ptr.vmem [resolvable:$true] %s20_s9 }
  0x10   :  { %s1305_s10 = scalar_lea.vmem %s21_s9, 1024  ;;  %p1310_p6 = scmp.lt.s32.totalorder %s21_s9, %s21_s9 }
  0x11   :  { %p1306_p5 = scmp.ne.s32.totalorder %s21_s9, %s1305_s10  ;;  %p1311_p7 = scmp.lt.s32.totalorder %s1305_s10, %s1305_s10 }
  0x13   :  { %p1312_p8 = por %p1311_p7, %p1310_p6 }
  0x15   :  { %p1313_p9 = pnand %p1312_p8, %p1306_p5 }
  0x17   :  { %1316 = shalt.err (!%p1313_p9)
}
  0x18   :  { %s1367_s11 = smov 512   ;;  %s1368_s12 = smov 32  }
  0x19   :  { %26 = dma.hbm_to_vmem [thread:$0]  %s1445_s0, 1024, %s21_s9, [#allocation3], %s1367_s11, %s1367_s11, %s1368_s12  }
  0x1a   :  { %s1369_s15 = smov [#allocation7]  }
  0x1b   :  { %s46_s16 = sshll.u32 %s1369_s15, 4  ;;  %s47_s16 = int_to_ptr.vmem [resolvable:$true] %s46_s16 }
  0x1c   :  { %s1325_s1 = scalar_lea.vmem %s47_s16, 1024  ;;  %p1330_p11 = scmp.lt.s32.totalorder %s47_s16, %s47_s16 }
  0x1d   :  { %p1326_p10 = scmp.ne.s32.totalorder %s47_s16, %s1325_s1  ;;  %p1331_p12 = scmp.lt.s32.totalorder %s1325_s1, %s1325_s1 }
  0x1f   :  { %p1332_p13 = por %p1331_p12, %p1330_p11 }
  0x21   :  { %p1333_p0 = pnand %p1332_p13, %p1326_p10 }
  0x23   :  { %1336 = shalt.err (!%p1333_p0)
}
  0x24   :  { %52 = dma.hbm_to_vmem [thread:$0]  %s1448_s3, 1024, %s47_s16, [#allocation6], %s1364_s27, %s1364_s27, %s1365_s28  }
  0x25   :  { %1357 = dma.done.wait [#allocation3], 1024  }
  0x26   :  { %1358 = vsyncadd [#allocation3], 4294966272 }
  0x27   :  { %1359 = dma.done.wait [#allocation6], 9216  }
  0x28   :  { %1360 = vsyncadd [#allocation6], 4294958080  ;;  %v1197_v0 = vld [vmem:[#allocation5 + $0x78] sm:$0xff]   ;;  %v1201_v4 = vld [vmem:[#allocation5 + $0x70] sm:$0xff]   ;;  %vm1371_vm0 = vmmov 0   ;;  %s1372_s23 = smov [#allocation8]  }
  0x29   :  { %v1198_v1 = vld [vmem:[#allocation5 + $0xf8] sm:$0xff]   ;;  %1068 = vmatprep.subr.bf16.mxu0 %v1197_v0  ;;  %v1202_v5 = vld [vmem:[#allocation5 + $0xf0] sm:$0xff]   ;;  %v1205_v8 = vld [vmem:[#allocation5 + $0x68] sm:$0xff]   ;;  %s971_s24 = sshll.u32 %s1372_s23, 4  ;;  %s972_s24 = int_to_ptr.vmem [resolvable:$true] %s971_s24 }
  0x2a   :  { %v1199_v2 = vld [vmem:[#allocation5 + $0x38] sm:$0xff]   ;;  %1090 = vmatprep.subr.bf16.mxu1 %v1198_v1  ;;  %v1203_v6 = vld [vmem:[#allocation5 + $0x30] sm:$0xff]   ;;  %v1206_v9 = vld [vmem:[#allocation5 + $0xe8] sm:$0xff]   ;;  %p1342_p2 = scmp.lt.s32.totalorder %s972_s24, %s972_s24 }
  0x2b   :  { %v1200_v3 = vld [vmem:[#allocation5 + $0xb8] sm:$0xff]   ;;  %1069 = vmatpush3.bf16.msra.mxu0 %v1199_v2  ;;  %v1204_v7 = vld [vmem:[#allocation5 + $0xb0] sm:$0xff]   ;;  %v1207_v10 = vld [vmem:[#allocation5 + $0x28] sm:$0xff]  }
  0x2c   :  { %1091 = vmatpush3.bf16.msra.mxu1 %v1200_v3  ;;  %1070 = vmatprep.subr.bf16.mxu0 %v1201_v4  ;;  %v1208_v11 = vld [vmem:[#allocation5 + $0xa8] sm:$0xff]   ;;  %v1209_v12 = vld [vmem:[#allocation5 + $0x60] sm:$0xff]   ;;  %v1213_v16 = vld [vmem:[#allocation5 + $0x58] sm:$0xff]  }
  0x2d   :  { %1092 = vmatprep.subr.bf16.mxu1 %v1202_v5  ;;  %v1210_v13 = vld [vmem:[#allocation5 + $0xe0] sm:$0xff]   ;;  %v1214_v17 = vld [vmem:[#allocation5 + $0xd8] sm:$0xff]   ;;  %v1217_v20 = vld [vmem:[#allocation5 + $0x50] sm:$0xff]  }
  0x2e   :  { %v1211_v14 = vld [vmem:[#allocation5 + $0x20] sm:$0xff]   ;;  %v1215_v18 = vld [vmem:[#allocation5 + $0x18] sm:$0xff]   ;;  %v1218_v21 = vld [vmem:[#allocation5 + $0xd0] sm:$0xff]  }
  0x2f   :  { %1071 = vmatpush3.bf16.msra.mxu0 %v1203_v6  ;;  %v1212_v15 = vld [vmem:[#allocation5 + $0xa0] sm:$0xff]   ;;  %v1216_v19 = vld [vmem:[#allocation5 + $0x98] sm:$0xff]   ;;  %v1219_v22 = vld [vmem:[#allocation5 + $0x10] sm:$0xff]  }
  0x30   :  { %1093 = vmatpush3.bf16.msra.mxu1 %v1204_v7  ;;  %1072 = vmatprep.subr.bf16.mxu0 %v1205_v8  ;;  %v1220_v23 = vld [vmem:[#allocation5 + $0x90] sm:$0xff]   ;;  %v1221_v24 = vld [vmem:[#allocation5 + $0x48] sm:$0xff]   ;;  %v1225_v28 = vld [vmem:[#allocation5 + $0x40] sm:$0xff]  }
  0x31   :  { %1094 = vmatprep.subr.bf16.mxu1 %v1206_v9  ;;  %v1222_v25 = vld [vmem:[#allocation5 + $0xc8] sm:$0xff]   ;;  %v1226_v29 = vld [vmem:[#allocation5 + $0xc0] sm:$0xff]   ;;  %v1229_v40 = vld [vmem:[#allocation5 + $0x178] sm:$0xff]  }
  0x32   :  { %v1223_v26 = vld [vmem:[#allocation5 + $0x8] sm:$0xff]   ;;  %v1227_v30 = vld [vmem:[#allocation5] sm:$0xff]   ;;  %v1230_v41 = vld [vmem:[#allocation5 + $0x1f8] sm:$0xff]  }
  0x33   :  { %1073 = vmatpush3.bf16.msra.mxu0 %v1207_v10  ;;  %v1224_v27 = vld [vmem:[#allocation5 + $0x88] sm:$0xff]   ;;  %v1228_v31 = vld [vmem:[#allocation5 + $0x80] sm:$0xff]   ;;  %v1231_v42 = vld [vmem:[#allocation5 + $0x138] sm:$0xff]  }
  0x34   :  { %1095 = vmatpush3.bf16.msra.mxu1 %v1208_v11  ;;  %1074 = vmatprep.subr.bf16.mxu0 %v1209_v12  ;;  %v69_v32 = vld [vmem:[#allocation2] sm:$0xff]  ;;  %v70_v34 = vld [vmem:[#allocation2 + $0x8] sm:$0xff]  ;;  %v1232_v43 = vld [vmem:[#allocation5 + $0x1b8] sm:$0xff]  }
  0x35   :  { %1096 = vmatprep.subr.bf16.mxu1 %v1210_v13  ;;  %v73_v33 = vld [vmem:[#allocation2 + $0x20] sm:$0xff]  ;;  %v74_v37 = vld [vmem:[#allocation2 + $0x28] sm:$0xff]  ;;  %v1233_v44 = vld [vmem:[#allocation5 + $0x170] sm:$0xff]  }
  0x36   :  { %v985_v35 = vcombine.low %v69_v32, %v73_v33  ;;  %v986_v36 = vcombine.high %v69_v32, %v73_v33  ;;  %v987_v38 = vcombine.low %v70_v34, %v74_v37  ;;  %v988_v39 = vcombine.high %v70_v34, %v74_v37  ;;  %v1234_v45 = vld [vmem:[#allocation5 + $0x1f0] sm:$0xff]   ;;  %v1237_v48 = vld [vmem:[#allocation5 + $0x168] sm:$0xff]   ;;  %v1241_v52 = vld [vmem:[#allocation5 + $0x160] sm:$0xff]  }
  0x37   :  { %1075 = vmatpush3.bf16.msra.mxu0 %v1211_v14  ;;  %v1235_v46 = vld [vmem:[#allocation5 + $0x130] sm:$0xff]   ;;  %v1238_v49 = vld [vmem:[#allocation5 + $0x1e8] sm:$0xff]   ;;  %v1242_v53 = vld [vmem:[#allocation5 + $0x1e0] sm:$0xff]  }
  0x38   :  { %1097 = vmatpush3.bf16.msra.mxu1 %v1212_v15  ;;  %1076 = vmatprep.subr.bf16.mxu0 %v1213_v16  ;;  %v1236_v47 = vld [vmem:[#allocation5 + $0x1b0] sm:$0xff]   ;;  %v1239_v50 = vld [vmem:[#allocation5 + $0x128] sm:$0xff]   ;;  %v1243_v54 = vld [vmem:[#allocation5 + $0x120] sm:$0xff]  }
  0x39   :  { %1098 = vmatprep.subr.bf16.mxu1 %v1214_v17  ;;  %668 = vmatprep.mubr.bf16.mxu0 %v986_v36  ;;  %v1240_v51 = vld [vmem:[#allocation5 + $0x1a8] sm:$0xff]   ;;  %v1244_v55 = vld [vmem:[#allocation5 + $0x1a0] sm:$0xff]   ;;  %v1245_v56 = vld [vmem:[#allocation5 + $0x158] sm:$0xff]   ;;  %v1370_v17 = vmov 0.0  }
  0x3a   :  { %709 = vmatprep.mubr.bf16.mxu1 %v988_v39  ;;  %v1246_v57 = vld [vmem:[#allocation5 + $0x1d8] sm:$0xff]   ;;  %v1249_v60 = vld [vmem:[#allocation5 + $0x150] sm:$0xff]   ;;  %v1253_v0 = vld [vmem:[#allocation5 + $0x148] sm:$0xff]  }
  0x3b   :  { %1077 = vmatpush3.bf16.msra.mxu0 %v1215_v18  ;;  %v1247_v58 = vld [vmem:[#allocation5 + $0x118] sm:$0xff]   ;;  %v1250_v61 = vld [vmem:[#allocation5 + $0x1d0] sm:$0xff]   ;;  %v1254_v1 = vld [vmem:[#allocation5 + $0x1c8] sm:$0xff]  }
  0x3c   :  { %1099 = vmatpush3.bf16.msra.mxu1 %v1216_v19  ;;  %1078 = vmatprep.subr.bf16.mxu0 %v1217_v20  ;;  %v1248_v59 = vld [vmem:[#allocation5 + $0x198] sm:$0xff]   ;;  %v1251_v62 = vld [vmem:[#allocation5 + $0x110] sm:$0xff]   ;;  %v1255_v2 = vld [vmem:[#allocation5 + $0x108] sm:$0xff]  }
  0x3d   :  { %1100 = vmatprep.subr.bf16.mxu1 %v1218_v21  ;;  %v1252_v63 = vld [vmem:[#allocation5 + $0x190] sm:$0xff]   ;;  %v1256_v3 = vld [vmem:[#allocation5 + $0x188] sm:$0xff]   ;;  %v1257_v4 = vld [vmem:[#allocation5 + $0x140] sm:$0xff]  }
  0x3e   :  { %v1258_v5 = vld [vmem:[#allocation5 + $0x1c0] sm:$0xff]   ;;  %v71_v8 = vld [vmem:[#allocation2 + $0x10] sm:$0xff]  ;;  %v72_v12 = vld [vmem:[#allocation2 + $0x18] sm:$0xff] }
  0x3f   :  { %1079 = vmatpush3.bf16.msra.mxu0 %v1219_v22  ;;  %v1259_v6 = vld [vmem:[#allocation5 + $0x100] sm:$0xff]   ;;  %v75_v9 = vld [vmem:[#allocation2 + $0x30] sm:$0xff]  ;;  %v76_v13 = vld [vmem:[#allocation2 + $0x38] sm:$0xff] }
  0x40   :  { %1101 = vmatpush3.bf16.msra.mxu1 %v1220_v23  ;;  %1080 = vmatprep.subr.bf16.mxu0 %v1221_v24  ;;  %v1260_v7 = vld [vmem:[#allocation5 + $0x180] sm:$0xff]   ;;  %v989_v10 = vcombine.low %v71_v8, %v75_v9  ;;  %v990_v11 = vcombine.high %v71_v8, %v75_v9  ;;  %v991_v14 = vcombine.low %v72_v12, %v76_v13  ;;  %v1261_v16 = vld [vmem:[#allocation7 + $0x38] sm:$0xff]   ;;  %v1262_v18 = vld [vmem:[#allocation7 + $0x30] sm:$0xff]  }
  0x41   :  { %1102 = vmatprep.subr.bf16.mxu1 %v1222_v25  ;;  %v992_v15 = vcombine.high %v72_v12, %v76_v13  ;;  %v1263_v19 = vld [vmem:[#allocation7 + $0x28] sm:$0xff]   ;;  %v1264_v20 = vld [vmem:[#allocation7 + $0x20] sm:$0xff]   ;;  %v1265_v21 = vld [vmem:[#allocation7 + $0x18] sm:$0xff]  }
  0x42   :  { %v1266_v22 = vld [vmem:[#allocation7 + $0x10] sm:$0xff]   ;;  %v1267_v23 = vld [vmem:[#allocation7 + $0x8] sm:$0xff]   ;;  %v1268_v24 = vld [vmem:[#allocation7] sm:$0xff]  }
  0x43   :  { %1081 = vmatpush3.bf16.msra.mxu0 %v1223_v26  ;;  %v984_v32 = vld [vmem:[%s1447_s2] ss:$0 sm:$0xff] }
  0x44   :  { %1103 = vmatpush3.bf16.msra.mxu1 %v1224_v27  ;;  %1082 = vmatprep.subr.bf16.mxu0 %v1225_v28 }
  0x45   :  { %1104 = vmatprep.subr.bf16.mxu1 %v1226_v29 }
  0x47   :  { %1083 = vmatpush3.bf16.msra.mxu0 %v1227_v30 }
  0x48   :  { %1105 = vmatpush3.bf16.msra.mxu1 %v1228_v31  ;;  %1112 = vmatprep.subr.bf16.mxu0 %v1229_v40 }
  0x49   :  { %1134 = vmatprep.subr.bf16.mxu1 %v1230_v41 }
  0x4a   :  { %669 = vmatmul.mubr.bf16.vlgmr.msra.gmra.mxu0 %v985_v35 }
  0x4b   :  { %710 = vmatmul.mubr.bf16.vlgmr.msra.gmra.mxu1 %v987_v38  ;;  %1113 = vmatpush3.bf16.msra.mxu0 %v1231_v42 }
  0x4c   :  { %1135 = vmatpush3.bf16.msra.mxu1 %v1232_v43  ;;  %1114 = vmatprep.subr.bf16.mxu0 %v1233_v44 }
  0x4d   :  { %1136 = vmatprep.subr.bf16.mxu1 %v1234_v45  ;;  %750 = vmatprep.mubr.bf16.mxu0 %v990_v11 }
  0x4e   :  { %791 = vmatprep.mubr.bf16.mxu1 %v992_v15 }
  0x4f   :  { %1115 = vmatpush3.bf16.msra.mxu0 %v1235_v46 }
  0x50   :  { %1137 = vmatpush3.bf16.msra.mxu1 %v1236_v47  ;;  %1116 = vmatprep.subr.bf16.mxu0 %v1237_v48 }
  0x51   :  { %1138 = vmatprep.subr.bf16.mxu1 %v1238_v49 }
  0x53   :  { %1117 = vmatpush3.bf16.msra.mxu0 %v1239_v50 }
  0x54   :  { %1139 = vmatpush3.bf16.msra.mxu1 %v1240_v51  ;;  %1118 = vmatprep.subr.bf16.mxu0 %v1241_v52 }
  0x55   :  { %1140 = vmatprep.subr.bf16.mxu1 %v1242_v53 }
  0x57   :  { %1119 = vmatpush3.bf16.msra.mxu0 %v1243_v54 }
  0x58   :  { %1141 = vmatpush3.bf16.msra.mxu1 %v1244_v55  ;;  %1120 = vmatprep.subr.bf16.mxu0 %v1245_v56 }
  0x59   :  { %1142 = vmatprep.subr.bf16.mxu1 %v1246_v57 }
  0x5b   :  { %1121 = vmatpush3.bf16.msra.mxu0 %v1247_v58 }
  0x5c   :  { %1143 = vmatpush3.bf16.msra.mxu1 %v1248_v59  ;;  %1122 = vmatprep.subr.bf16.mxu0 %v1249_v60 }
  0x5d   :  { %1144 = vmatprep.subr.bf16.mxu1 %v1250_v61  ;;  %v915_v61 = vlaneseq }
  0x5f   :  { %1123 = vmatpush3.bf16.msra.mxu0 %v1251_v62  ;;  %v916_v62 = vand.u32 127, %v915_v61 }
  0x60   :  { %1145 = vmatpush3.bf16.msra.mxu1 %v1252_v63  ;;  %1124 = vmatprep.subr.bf16.mxu0 %v1253_v0  ;;  %v1057_v63 = vld [vmem:[%s1449_s4] ss:$0 sm:$0xff] }
  0x61   :  { %1146 = vmatprep.subr.bf16.mxu1 %v1254_v1  ;;  %vm917_vm1 = vcmp.lt.s32.totalorder %v916_v62, 32 }
  0x63   :  { %1125 = vmatpush3.bf16.msra.mxu0 %v1255_v2 }
  0x64   :  { %1147 = vmatpush3.bf16.msra.mxu1 %v1256_v3  ;;  %1126 = vmatprep.subr.bf16.mxu0 %v1257_v4 }
  0x65   :  { %1148 = vmatprep.subr.bf16.mxu1 %v1258_v5 }
  0x67   :  { %1127 = vmatpush3.bf16.msra.mxu0 %v1259_v6 }
  0x68   :  { %1149 = vmatpush3.bf16.msra.mxu1 %v1260_v7  ;;  %1165 = vmatprep.subr.bf16.mxu0 %v1370_v17 }
  0x6a   :  { %751 = vmatmul.mubr.bf16.vlgmr.msra.gmra.mxu0 %v989_v10 }
  0x6b   :  { %792 = vmatmul.mubr.bf16.vlgmr.msra.gmra.mxu1 %v991_v14  ;;  %1166 = vmatpush3.bf16.msra.mxu0 %v1261_v16 }
  0x6c   :  { %1167 = vmatprep.subr.bf16.mxu0 %v1370_v17  ;;  %1181 = vmatprep.mubr.msk.bf16.mxu0 %vm1371_vm0, %v1370_v17 }
  0x6f   :  { %1168 = vmatpush3.bf16.msra.mxu0 %v1262_v18 }
  0x70   :  { %1169 = vmatprep.subr.bf16.mxu0 %v1370_v17 }
  0x73   :  { %1170 = vmatpush3.bf16.msra.mxu0 %v1263_v19 }
  0x74   :  { %1171 = vmatprep.subr.bf16.mxu0 %v1370_v17 }
  0x77   :  { %1172 = vmatpush3.bf16.msra.mxu0 %v1264_v20 }
  0x78   :  { %1173 = vmatprep.subr.bf16.mxu0 %v1370_v17 }
  0x7b   :  { %1174 = vmatpush3.bf16.msra.mxu0 %v1265_v21 }
  0x7c   :  { %1175 = vmatprep.subr.bf16.mxu0 %v1370_v17 }
  0x7f   :  { %1176 = vmatpush3.bf16.msra.mxu0 %v1266_v22 }
  0x80   :  { %1177 = vmatprep.subr.bf16.mxu0 %v1370_v17 }
  0x83   :  { %1178 = vmatpush3.bf16.msra.mxu0 %v1267_v23 }
  0x84   :  { %1179 = vmatprep.subr.bf16.mxu0 %v1370_v17 }
  0x87   :  { %1180 = vmatpush3.bf16.msra.mxu0 %v1268_v24 }
 0x10a   :  { %v1084_v25 = vpop.f32.mrf.mxu0 }
 0x10b   :  { %v1106_v26 = vpop.f32.mrf.mxu1 }
 0x10c   :  { %v1085_v27 = vpop.f32.mrf.mxu0 }
 0x10d   :  { %v1107_v28 = vpop.f32.mrf.mxu1  ;;  %v1086_v30 = vadd.f32 %v1085_v27, %v1084_v25  ;;  %v1066_v25 = vld [vmem:[%s1450_s5] ss:$0 sm:$0xff]  ;;  %s1337_s5 = scalar_lea.vmem %s972_s24, 256 }
 0x10e   :  { %v1087_v29 = vpop.f32.mrf.mxu0  ;;  %v1108_v35 = vadd.f32 %v1107_v28, %v1106_v26  ;;  %v1067_v27 = vld [vmem:[%s1451_s6] ss:$0 sm:$0xff]  ;;  %p1338_p1 = scmp.ne.s32.totalorder %s972_s24, %s1337_s5  ;;  %p1343_p3 = scmp.lt.s32.totalorder %s1337_s5, %s1337_s5 }
 0x10f   :  { %v1109_v31 = vpop.f32.mrf.mxu1  ;;  %v671_v34 = vadd.f32 %v1086_v30, %v984_v32 }
 0x110   :  { %v1088_v33 = vpop.f32.mrf.mxu0  ;;  %p1344_p4 = por %p1343_p3, %p1342_p2 }
 0x111   :  { %v1089_v36 = vadd.f32 %v1088_v33, %v1087_v29  ;;  %v1110_v37 = vpop.f32.mrf.mxu1  ;;  %v712_v41 = vadd.f32 %v1108_v35, %v671_v34 }
 0x112   :  { %v1111_v46 = vadd.f32 %v1110_v37, %v1109_v31  ;;  %p1345_p5 = pnand %p1344_p4, %p1338_p1 }
 0x113   :  { %v674_v42 = vadd.f32 %v1089_v36, %v984_v32 }
 0x115   :  { %v715_v51 = vadd.f32 %v1111_v46, %v674_v42 }
 0x12a   :  { %v1128_v38 = vpop.f32.mrf.mxu0 }
 0x12b   :  { %v1150_v39 = vpop.f32.mrf.mxu1 }
 0x12c   :  { %v1129_v40 = vpop.f32.mrf.mxu0 }
 0x12d   :  { %v1130_v43 = vadd.f32 %v1129_v40, %v1128_v38  ;;  %v1151_v44 = vpop.f32.mrf.mxu1 }
 0x12e   :  { %v1131_v45 = vpop.f32.mrf.mxu0  ;;  %v1152_v49 = vadd.f32 %v1151_v44, %v1150_v39 }
 0x12f   :  { %v753_v47 = vadd.f32 %v1130_v43, %v712_v41  ;;  %v1153_v48 = vpop.f32.mrf.mxu1 }
 0x130   :  { %v1132_v50 = vpop.f32.mrf.mxu0 }
 0x131   :  { %v1133_v52 = vadd.f32 %v1132_v50, %v1131_v45  ;;  %v1154_v53 = vpop.f32.mrf.mxu1  ;;  %v794_v54 = vadd.f32 %v1152_v49, %v753_v47 }
 0x132   :  { %v1155_v56 = vadd.f32 %v1154_v53, %v1153_v48 }
 0x133   :  { %v756_v55 = vadd.f32 %v1133_v52, %v715_v51  ;;  %1269 = vtanh.f32 %v794_v54 }
 0x135   :  { %v797_v57 = vadd.f32 %v1155_v56, %v756_v55 }
 0x137   :  { %1271 = vtanh.f32 %v797_v57 }
 0x140   :  { %v1270_v58 = vpop.eup %1269 }
 0x144   :  { %v1272_v59 = vpop.eup %1271 }
 0x145   :  { %v802_v60 = vpack.c.bf16 %v1272_v59, %v1270_v58 }
 0x147   :  { %1182 = vmatmul.mubr.bf16.vlgmr.msra.gmra.mxu0 %v802_v60 }
 0x207   :  { %v908_v0 = vpop.f32.mrf.mxu0 }
 0x208   :  { %v909_v1 = vadd.f32 %v1057_v63, %v908_v0 }
 0x209   :  { %v1183_v2 = vpop.f32.mrf.mxu0 }
 0x20a   :  { %v918_v3 = vsel %vm917_vm1, %v909_v1, 0.0 }
 0x20b   :  { %920 = vadd.xlane.f32.xlu0 %v918_v3  ;;  %v911_v4 = vpop.f32.mrf.mxu0 }
 0x20c   :  { %v912_v5 = vadd.f32 %v1057_v63, %v911_v4 }
 0x20d   :  { %v1184_v6 = vpop.f32.mrf.mxu0 }
 0x20e   :  { %v919_v7 = vsel %vm917_vm1, %v912_v5, 0.0 }
 0x20f   :  { %922 = vadd.xlane.f32.xlu0 %v919_v7 }
 0x294   :  { %v921_v8 = vpop.xlane.xlu0 %920 }
 0x295   :  { %v924_v9 = vmul.f32 0.03125, %v921_v8 }
 0x297   :  { %v926_v10 = vsub.f32 %v909_v1, %v924_v9 }
 0x298   :  { %v923_v11 = vpop.xlane.xlu0 %922 }
 0x299   :  { %v925_v12 = vmul.f32 0.03125, %v923_v11  ;;  %v928_v13 = vsel %vm917_vm1, %v926_v10, 0.0 }
 0x29a   :  { %v930_v14 = vmul.f32 %v928_v13, %v928_v13 }
 0x29b   :  { %v927_v15 = vsub.f32 %v912_v5, %v925_v12 }
 0x29c   :  { %932 = vadd.xlane.f32.xlu1 %v930_v14 }
 0x29d   :  { %v929_v16 = vsel %vm917_vm1, %v927_v15, 0.0 }
 0x29e   :  { %v931_v17 = vmul.f32 %v929_v16, %v929_v16 }
 0x2a0   :  { %934 = vadd.xlane.f32.xlu1 %v931_v17 }
 0x325   :  { %v933_v18 = vpop.xlane.xlu1 %932 }
 0x326   :  { %v936_v19 = vmul.f32 0.03125, %v933_v18 }
 0x328   :  { %v938_v20 = vadd.f32 1e-05, %v936_v19 }
 0x329   :  { %v935_v21 = vpop.xlane.xlu1 %934 }
 0x32a   :  { %1273 = vrsqrt.f32 %v938_v20  ;;  %v937_v22 = vmul.f32 0.03125, %v935_v21 }
 0x32c   :  { %v939_v23 = vadd.f32 1e-05, %v937_v22 }
 0x32e   :  { %1275 = vrsqrt.f32 %v939_v23 }
 0x337   :  { %v1274_v24 = vpop.eup %1273 }
 0x338   :  { %v942_v26 = vmul.f32 %v1274_v24, %v928_v13 }
 0x33a   :  { %v951_v28 = vmul.f32 %v1066_v25, %v942_v26 }
 0x33b   :  { %v1276_v29 = vpop.eup %1275 }
 0x33c   :  { %v943_v30 = vmul.f32 %v1276_v29, %v929_v16  ;;  %v960_v31 = vadd.f32 %v1067_v27, %v951_v28 }
 0x33e   :  { %v952_v32 = vmul.f32 %v1066_v25, %v943_v30  ;;  %v962_v33 = vsel %vm917_vm1, %v960_v31, %v909_v1 }
 0x33f   :  { %964 = vst [vmem:[#allocation8] sm:$0xff] %v962_v33 }
 0x340   :  { %v961_v34 = vadd.f32 %v1067_v27, %v952_v32 }
 0x342   :  { %v963_v35 = vsel %vm917_vm1, %v961_v34, %v912_v5 }
 0x343   :  { %965 = vst [vmem:[#allocation8 + $0x8] sm:$0xff] %v963_v35 }
 0x344   :  { %1348 = shalt.err (!%p1345_p5)
}
 0x345   :  { %s1373_s6 = smov 128   ;;  %s1374_s25 = smov 8  }
 0x346   :  { %977 = dma.vmem_to_hbm [thread:$0]  %s972_s24, 256, %s1452_s7, [#allocation4], %s1373_s6, %s1373_s6, %s1374_s25  }
 0x347   :  { %1361 = dma.done.wait [#allocation4], 256  }
 0x348   :  { %1362 = vsyncadd [#allocation4], 4294967040 }
 0x349   :  { %981 = vsyncpa [#allocation3], 1 }
 0x34a   :  { %982 = vsyncpa [#allocation6], 1 }
 0x34b   :  { %983 = vsyncpa [#allocation4], 1 }

</bundles_post_ra>
